<compile_context>
chip_gen: v5e
topology: v5e:2x2
jax: 0.10.0
libtpu: 0.0.40
codegen_flags: <defaults>
</compile_context>

<pallas_src>
import jax
import jax.numpy as jnp
from jax import lax
from jax.experimental import pallas as pl
from jax.experimental.pallas import tpu as pltpu


def _nll_kernel(pack_a_ref, y_b_ref, exp_b_ref, out_ref, acc_ref):
    """One (row-tile i, col-tile j) step of the tiled Cox NLL.

    pack_a_ref : (3, TM) f32  row0 = y[a], row1 = risk[a]-max(risk), row2 = e[a]
    y_b_ref    : (TB, 1) f32  y[b] (sublane orientation -> mask rows)
    exp_b_ref  : (1, TB) f32  exp(risk[b] - max(risk))
    out_ref    : (1, TM) f32  per-sample loss terms (written on the last j step)
    acc_ref    : (8, TM) f32  scratch; row0 accumulates num, row1 accumulates den
    """
    j = pl.program_id(1)

    @pl.when(j == 0)
    def _init():
        acc_ref[...] = jnp.zeros_like(acc_ref)

    y_a = pack_a_ref[0:1, :]                         # (1, TM)
    y_b = y_b_ref[...]                               # (TB, 1)

    # mask_t[b, a] = 1.0 iff y[a] <= y[b]   (risk set of sample a)
    mask_t = (y_a <= y_b).astype(jnp.float32)        # (TB, TM)

    # lhs: row 0 = exp(risk[b]-max), row 1 = ones, rows 2..7 = 0 (MXU padding).
    exp_b = exp_b_ref[...]                           # (1, TB)
    tb = exp_b.shape[1]
    row_idx = lax.broadcasted_iota(jnp.int32, (8, tb), 0)
    lhs = jnp.where(row_idx == 0, exp_b,
                    jnp.where(row_idx == 1, 1.0, 0.0))   # (8, TB)

    # Single MXU matmul folds both reductions: row0 -> num partial, row1 -> den partial.
    acc_ref[...] += jnp.dot(
        lhs, mask_t,
        precision=lax.Precision.HIGHEST,
        preferred_element_type=jnp.float32,
    )

    @pl.when(j == pl.num_programs(1) - 1)
    def _finalize():
        num = acc_ref[0:1, :]                        # (1, TM)  sum_b exp(risk[b]-M)*mask
        den = acc_ref[1:2, :]                        # (1, TM)  sum_b mask
        # log_loss - M = log(num) - log(den); the shift M cancels against the
        # shifted risk below, so it never needs to be passed into the kernel.
        log_loss = jnp.log(num) - jnp.log(den)
        risk_a = pack_a_ref[1:2, :]                  # (1, TM)  risk - M
        e_a = pack_a_ref[2:3, :]                     # (1, TM)
        out_ref[...] = (risk_a - log_loss) * e_a


def _round_up(v, m):
    return ((v + m - 1) // m) * m


def negative_log_likelihood(risk_pred, y, e, *, tile_m=512, tile_b=512):
    """risk_pred, y, e: (N, 1) arrays. Returns scalar f32 loss.

    Assumes sum(e) > 0 (same as the PyTorch reference; a zero-event batch
    silently gives inf/NaN there too).
    """
    n = risk_pred.shape[0]
    risk = risk_pred.reshape(n).astype(jnp.float32)
    yv = y.reshape(n).astype(jnp.float32)
    ev = e.reshape(n).astype(jnp.float32)

    # Hoisted out of the kernel (computed once, O(N)); max-shift = overflow safety.
    risk_shift = risk - jnp.max(risk)
    exp_shift = jnp.exp(risk_shift)

    # Tile sizes: a-axis (output samples) on lanes, b-axis (contraction) on
    # sublanes. Clamp for small N, keep multiples of 128 for (8,128) layout + MXU.
    tm = min(int(tile_m), _round_up(n, 128))
    tb = min(int(tile_b), _round_up(n, 128))
    n_a = _round_up(n, tm)
    n_b = _round_up(n, tb)

    # a-axis vectors, lane-dense and packed into one (3, n_a) input.
    # Padded samples: risk=0, e=0 -> their term is exactly 0.
    pack_a = jnp.stack(
        [
            jnp.pad(yv, (0, n_a - n), constant_values=-jnp.inf),
            jnp.pad(risk_shift, (0, n_a - n)),
            jnp.pad(ev, (0, n_a - n)),
        ],
        axis=0,
    )
    # b-axis vectors. Padded members get y=-inf so (y[a] <= -inf) == False for
    # every real sample a -> they never enter num/den.
    y_b = jnp.pad(yv, (0, n_b - n), constant_values=-jnp.inf).reshape(n_b, 1)
    exp_b = jnp.pad(exp_shift, (0, n_b - n)).reshape(1, n_b)

    grid = (n_a // tm, n_b // tb)

    term = pl.pallas_call(
        _nll_kernel,
        out_shape=jax.ShapeDtypeStruct((1, n_a), jnp.float32),
        grid_spec=pltpu.PrefetchScalarGridSpec(
            num_scalar_prefetch=0,
            grid=grid,
            in_specs=[
                pl.BlockSpec((3, tm), lambda i, j: (0, i)),   # packed y/risk/e (a axis)
                pl.BlockSpec((tb, 1), lambda i, j: (j, 0)),   # y (b axis, sublanes)
                pl.BlockSpec((1, tb), lambda i, j: (0, j)),   # exp(risk-max) (b axis)
            ],
            out_specs=pl.BlockSpec((1, tm), lambda i, j: (0, i)),
            scratch_shapes=[pltpu.VMEM((8, tm), jnp.float32)],
        ),
        compiler_params=pltpu.CompilerParams(
            dimension_semantics=("parallel", "arbitrary"),
            vmem_limit_bytes=32 * 1024 * 1024,   # headroom; actual use ~2 MiB/tile
        ),
    )(pack_a, y_b, exp_b)

    # Padded rows contribute exactly 0 (e=0, finite term): plain sum is exact.
    return -jnp.sum(term) / jnp.sum(ev)


def _reference_nll(risk_pred, y, e):
    # Direct transcription of the PyTorch forward, in plain JAX.
    mask = jnp.where((y.T - y) > 0.0, 0.0, 1.0)                      # (N, N)
    exp_loss = jnp.exp(risk_pred) * mask                             # (N, N)
    log_loss = jnp.log(exp_loss.sum(axis=0) / mask.sum(axis=0))      # (N,)
    log_loss = log_loss.reshape(-1, 1)                               # (N, 1)
    return -jnp.sum((risk_pred - log_loss) * e) / jnp.sum(e)


if __name__ == "__main__":
    key = jax.random.PRNGKey(0)
    k_risk, k_y, k_e = jax.random.split(key, 3)

    # Multi-tile case: N=200 with 128x128 tiles -> grid (2, 2) with tail padding.
    N = 200
    risk_pred = jax.random.normal(k_risk, (N, 1), dtype=jnp.float32)
    y = jax.random.uniform(k_y, (N, 1), dtype=jnp.float32, minval=0.1, maxval=5.0)
    e = (jax.random.uniform(k_e, (N, 1)) < 0.7).astype(jnp.float32)
    e = e.at[0, 0].set(1.0)  # guarantee at least one observed event (sum(e) > 0)

    out = jax.block_until_ready(
        negative_log_likelihood(risk_pred, y, e, tile_m=128, tile_b=128))
    ref = jax.block_until_ready(_reference_nll(risk_pred, y, e))
    assert jnp.allclose(out, ref, rtol=2e-4, atol=1e-5), (out, ref)

    # Tiny-N case with default tiles: single-tile grid, heavy padding path.
    N2 = 8
    rp2 = jax.random.normal(k_risk, (N2, 1), dtype=jnp.float32)
    y2 = jax.random.uniform(k_y, (N2, 1), dtype=jnp.float32, minval=0.1, maxval=5.0)
    e2 = (jax.random.uniform(k_e, (N2, 1)) < 0.7).astype(jnp.float32)
    e2 = e2.at[0, 0].set(1.0)

    out2 = jax.block_until_ready(negative_log_likelihood(rp2, y2, e2))
    ref2 = jax.block_until_ready(_reference_nll(rp2, y2, e2))
    assert jnp.allclose(out2, ref2, rtol=2e-4, atol=1e-5), (out2, ref2)

    print("KERNEL_OK")
</pallas_src>

<mosaic_0001>
module attributes {stable_mosaic.version = 11 : i64} {
  func.func @_nll_kernel(%arg0: i32, %arg1: i32, %arg2: memref<3x128xf32, #tpu.memory_space<vmem>>, %arg3: memref<128x1xf32, #tpu.memory_space<vmem>>, %arg4: memref<1x128xf32, #tpu.memory_space<vmem>>, %arg5: memref<1x128xf32, #tpu.memory_space<vmem>>, %arg6: memref<8x128xf32, #tpu.memory_space<vmem>>) attributes {dimension_semantics = [#tpu.dimension_semantics<parallel>, #tpu.dimension_semantics<arbitrary>], iteration_bounds = array<i64: 2, 2>, scalar_prefetch = 0 : i64, scratch_operands = 1 : i64, tpu.core_type = #tpu.core_type<tc>, window_params = [{transform_indices = @transform_0, window_bounds = array<i64: 3, 128>}, {transform_indices = @transform_1, window_bounds = array<i64: 128, 1>}, {transform_indices = @transform_2, window_bounds = array<i64: 1, 128>}, {transform_indices = @transform_3, window_bounds = array<i64: 1, 128>}]} {
    %c0_i32 = arith.constant 0 : i32
    %0 = arith.cmpi eq, %arg1, %c0_i32 : i32
    %1 = arith.extui %0 : i1 to i32
    %c0_i32_0 = arith.constant 0 : i32
    %2 = arith.cmpi ne, %1, %c0_i32_0 : i32
    scf.if %2 {
      %cst_15 = arith.constant 0.000000e+00 : f32
      %29 = vector.broadcast %cst_15 : f32 to vector<8x128xf32>
      %c0_16 = arith.constant 0 : index
      %c0_17 = arith.constant 0 : index
      %30 = vector.load %arg6[%c0_16, %c0_17] : memref<8x128xf32, #tpu.memory_space<vmem>>, vector<8x128xf32>
      tpu.vector_store %arg6[%c0_16, %c0_17], %29 {strides = array<i32>} : memref<8x128xf32, #tpu.memory_space<vmem>>, vector<8x128xf32>,
    } else {
    }
    %c0 = arith.constant 0 : index
    %c0_1 = arith.constant 0 : index
    %3 = vector.load %arg2[%c0, %c0_1] : memref<3x128xf32, #tpu.memory_space<vmem>>, vector<1x128xf32>
    %c0_2 = arith.constant 0 : index
    %c0_3 = arith.constant 0 : index
    %4 = vector.load %arg3[%c0_2, %c0_3] : memref<128x1xf32, #tpu.memory_space<vmem>>, vector<128x1xf32>
    %5 = vector.broadcast %3 : vector<1x128xf32> to vector<128x128xf32>
    %6 = vector.broadcast %4 : vector<128x1xf32> to vector<128x128xf32>
    %7 = arith.cmpf ole, %5, %6 : vector<128x128xf32>
    %8 = arith.extui %7 : vector<128x128xi1> to vector<128x128xi32>
    %9 = arith.sitofp %8 : vector<128x128xi32> to vector<128x128xf32>
    %c0_4 = arith.constant 0 : index
    %c0_5 = arith.constant 0 : index
    %10 = vector.load %arg4[%c0_4, %c0_5] : memref<1x128xf32, #tpu.memory_space<vmem>>, vector<1x128xf32>
    %11 = tpu.iota {dimensions = array<i32: 0>} : vector<8x128xi32>
    %c0_i32_6 = arith.constant 0 : i32
    %12 = vector.broadcast %c0_i32_6 : i32 to vector<8x128xi32>
    %13 = arith.cmpi eq, %11, %12 : vector<8x128xi32>
    %c1_i32 = arith.constant 1 : i32
    %14 = vector.broadcast %c1_i32 : i32 to vector<8x128xi32>
    %15 = arith.cmpi eq, %11, %14 : vector<8x128xi32>
    %cst = arith.constant 1.000000e+00 : f32
    %cst_7 = arith.constant 0.000000e+00 : f32
    %16 = vector.broadcast %cst : f32 to vector<8x128xf32>
    %17 = vector.broadcast %cst_7 : f32 to vector<8x128xf32>
    %18 = arith.select %15, %16, %17 : vector<8x128xi1>, vector<8x128xf32>
    %19 = vector.shape_cast %10 : vector<1x128xf32> to vector<1x128xf32>
    %20 = vector.broadcast %19 : vector<1x128xf32> to vector<8x128xf32>
    %21 = arith.select %13, %20, %18 : vector<8x128xi1>, vector<8x128xf32>
    %c0_8 = arith.constant 0 : index
    %c0_9 = arith.constant 0 : index
    %22 = vector.load %arg6[%c0_8, %c0_9] : memref<8x128xf32, #tpu.memory_space<vmem>>, vector<8x128xf32>
    %cst_10 = arith.constant dense<0.000000e+00> : vector<8x128xf32>
    %23 = tpu.matmul %21, %9, %cst_10 {dimension_numbers = #tpu.dot_dimension_numbers<[1], [0], [0], [1], [0, 0, 1, 1], [], []>, precision = #tpu.contract_precision<fp32>} : vector<8x128xf32>, vector<128x128xf32>, vector<8x128xf32> -> vector<8x128xf32>
    %24 = arith.addf %22, %23 : vector<8x128xf32>
    %c0_11 = arith.constant 0 : index
    %c0_12 = arith.constant 0 : index
    %25 = vector.load %arg6[%c0_11, %c0_12] : memref<8x128xf32, #tpu.memory_space<vmem>>, vector<8x128xf32>
    tpu.vector_store %arg6[%c0_11, %c0_12], %24 {strides = array<i32>} : memref<8x128xf32, #tpu.memory_space<vmem>>, vector<8x128xf32>,
    %c1_i32_13 = arith.constant 1 : i32
    %26 = arith.cmpi eq, %arg1, %c1_i32_13 : i32
    %27 = arith.extui %26 : i1 to i32
    %c0_i32_14 = arith.constant 0 : i32
    %28 = arith.cmpi ne, %27, %c0_i32_14 : i32
    scf.if %28 {
      %c0_15 = arith.constant 0 : index
      %c0_16 = arith.constant 0 : index
      %29 = vector.load %arg6[%c0_15, %c0_16] : memref<8x128xf32, #tpu.memory_space<vmem>>, vector<1x128xf32>
      %c1 = arith.constant 1 : index
      %c0_17 = arith.constant 0 : index
      %30 = vector.load %arg6[%c1, %c0_17] : memref<8x128xf32, #tpu.memory_space<vmem>>, vector<1x128xf32>
      %31 = math.log %29 : vector<1x128xf32>
      %32 = math.log %30 : vector<1x128xf32>
      %33 = arith.subf %31, %32 : vector<1x128xf32>
      %c1_18 = arith.constant 1 : index
      %c0_19 = arith.constant 0 : index
      %34 = vector.load %arg2[%c1_18, %c0_19] : memref<3x128xf32, #tpu.memory_space<vmem>>, vector<1x128xf32>
      %c2 = arith.constant 2 : index
      %c0_20 = arith.constant 0 : index
      %35 = vector.load %arg2[%c2, %c0_20] : memref<3x128xf32, #tpu.memory_space<vmem>>, vector<1x128xf32>
      %36 = arith.subf %34, %33 : vector<1x128xf32>
      %37 = arith.mulf %36, %35 : vector<1x128xf32>
      %c0_21 = arith.constant 0 : index
      %c0_22 = arith.constant 0 : index
      %38 = vector.load %arg5[%c0_21, %c0_22] : memref<1x128xf32, #tpu.memory_space<vmem>>, vector<1x128xf32>
      tpu.vector_store %arg5[%c0_21, %c0_22], %37 {strides = array<i32>} : memref<1x128xf32, #tpu.memory_space<vmem>>, vector<1x128xf32>,
    } else {
    }
    return
  }
  func.func @transform_0(%arg0: i32, %arg1: i32) -> (i32, i32) {
    %c0_i32 = arith.constant 0 : i32
    %c0_i32_0 = arith.constant 0 : i32
    return %c0_i32, %arg0 : i32, i32
  }
  func.func @transform_1(%arg0: i32, %arg1: i32) -> (i32, i32) {
    %c0_i32 = arith.constant 0 : i32
    %c0_i32_0 = arith.constant 0 : i32
    return %arg1, %c0_i32 : i32, i32
  }
  func.func @transform_2(%arg0: i32, %arg1: i32) -> (i32, i32) {
    %c0_i32 = arith.constant 0 : i32
    %c0_i32_0 = arith.constant 0 : i32
    return %c0_i32, %arg1 : i32, i32
  }
  func.func @transform_3(%arg0: i32, %arg1: i32) -> (i32, i32) {
    %c0_i32 = arith.constant 0 : i32
    %c0_i32_0 = arith.constant 0 : i32
    return %c0_i32, %arg0 : i32, i32
  }
}

</mosaic_0001>

<bundles_post_ra>
// kernel: tpu_custom_call.1
= control target key start
LH: loop header
LB: loop body
LE: loop exit
PB: predicated region body
PF: predicated region fallthrough
CT: control target
= control target key end

     0   :  { %8 = vsyncpa [#allocation4], 0  ;;  %s1721_s0 = inlined_call_operand.vmem [shape: f32[3,256], index: 0, kind: input, shape index: {}]   ;;  %s1722_s1 = inlined_call_operand.vmem [shape: f32[256,1], index: 1, kind: input, shape index: {}]   ;;  %s1723_s2 = inlined_call_operand.vmem [shape: f32[1,256], index: 2, kind: input, shape index: {}]   ;;  %s1724_s3 = inlined_call_operand.hbm [shape: f32[1,256], index: 3, kind: output, shape index: {}]  }
   0x1   :  { %10 = vsyncpa [#allocation4 + $0x1], 0  ;;  %s1114_s12 = smov 0   ;;  %s1116_s13 = smov 0  }
   0x2   :  { %s1118_s14 = smov 0   ;;  %s1120_s15 = smov 0  }
   0x3   :  { %s1122_s16 = smov 0   ;;  %s1124_s17 = smov 0  }
   0x4   :  { %s1126_s18 = smov 0   ;;  %s1128_s19 = smov 0  }
   0x5 LB: > { %s834_s20 = sadd.s32 4294967295, %s1088_s19   ;;  %s835_s21 = sadd.s32 4294967294, %s1088_s19   ;;  %s1088_s19 = sphi %s1128_s19, %s16_s19   ;;  %s1084_s18 = sphi %s1126_s18, %s1738_s18   ;;  %s1080_s17 = sphi %s1124_s17, %s1737_s17   ;;  %s1076_s16 = sphi %s1122_s16, %s1736_s16   ;;  %s1072_s15 = sphi %s1120_s15, %s1735_s15   ;;  %s1068_s14 = sphi %s1118_s14, %s1734_s14   ;;  %s1064_s13 = sphi %s1116_s13, %s1733_s13   ;;  %s1060_s12 = sphi %s1114_s12, %s1732_s12  }
   0x6   : > { %s25_s22 = sadd.s32 1, %s1080_s17  ;;  %s28_s23 = sadd.s32 1, %s1084_s18 }
   0x7   : > { %p26_p0 = scmp.ge.s32.totalorder %s25_s22, 2  ;;  %p123_p1 = scmp.ne.s32.totalorder %s1068_s14, %s1064_s13 }
   0x8   : > { %p124_p2 = scmp.eq.s32.totalorder %s834_s20, 3  ;;  %p129_p4 = scmp.ne.s32.totalorder %s1064_s13, %s1060_s12 }
   0x9   : > { %s1740_s22 = smov (%p26_p0, %s25_s22), 0  ;;  %s1742_s23 = smov (!%p26_p0, %s28_s23), %s1084_s18 }
   0xa   : > { %p1163_p3 = por %p124_p2, %p123_p1  ;;  %p30_p5 = scmp.ge.s32.totalorder %s1742_s23, 2 }
   0xb   : > { %p130_p6 = scmp.eq.s32.totalorder %s835_s21, 3  ;;  %p838_p7 = scmp.ge.s32.totalorder %s1088_s19, 1 }
   0xc   : > { %p170_p8 = scmp.lt.s32.totalorder %s1088_s19, 5  ;;  %s1744_s23 = smov (%p30_p5, %s1742_s23), 0 }
   0xd   : > { %1727 = sst [smem:[#allocation6_spill]] %s1744_s23  ;;  %p1173_p9 = por %p130_p6, %p129_p4 }
   0xe   : > { %p171_p10 = pnand %p838_p7, %p170_p8  ;;  %s110_s26 = ssub.s32 %s1084_s18, %s1744_s23 }
   0xf   : > { %s113_s27 = sadd.s32 1, %s1068_s14  ;;  %p111_p11 = scmp.eq.s32.totalorder %s110_s26, 0 }
  0x10   : > { %174 = sbr.rel (%p171_p10) target bundleno = 403 (0x193), region = 32  ;;  %p200_p12 = scmp.lt.s32.totalorder (!%p171_p10), %s1076_s16, 1 }
  0x11   : > { %s1181_s28 = scalar_select %p111_p11, %s1068_s14, %s113_s27  }
  0x12   : > { %s840_s30 = sshll.u32 (!%p171_p10), %s1072_s15, 4  ;;  %p210_p0 = scmp.lt.s32.totalorder (!%p171_p10), %s1072_s15, 1 }
  0x13   : > { %p205_p13 = scmp.lt.s32.totalorder (!%p171_p10), %s840_s30, 31  ;;  %p842_p1 = scmp.ne.s32.totalorder (!%p171_p10), %s1072_s15, 0 }
  0x15   : > { %s201_s4 = scalar_select %p200_p12, %s1076_s16, 1 }
  0x16   : > { %s1746_s30 = smov (!%p205_p13, %s840_s30), 31 }
  0x17   : > { %s839_s5 = sshll.u32 %s201_s4, 2  ;;  %s841_s10 = sshll.u32 %s1746_s30, 3 }
  0x18   : > { %s1191_s8 = scalar_lea.vmem %s1721_s0, %s839_s5  ;;  %s1199_s21 = scalar_lea.vmem %s1722_s1, %s841_s10 }
  0x19   : > { %s1194_s9 = scalar_select %p210_p0, %s1072_s15, 1 }
  0x1a   : > { %s1729_s4 = sand.u32 1, %s1064_s13   ;;  %216 = sbr.rel (%p842_p1) target bundleno = 33 (0x21), region = 36 }
  0x1b   : > { %s212_s29 = scalar_lea.vmem %s1723_s2, %s1194_s9  ;;  %s1207_s23 = scalar_lea.vmem [#allocation3], %s1729_s4 }
  0x1f   : > { %v1090_v0 = vmov 0.0  }
  0x20   : > { %217 = vst [vmem:[#allocation2] sm:$0xff] %v1090_v0 }
  0x21 PF: > { %v234_v1 = vld [vmem:[%s1199_s21 + $0x78] sm:$0xff]  ;;  %v232_v2 = vld [vmem:[%s1199_s21 + $0x68] sm:$0xff]  ;;  %v1091_v4 = vmov 0   ;;  %v231_v5 = vld [vmem:[%s1199_s21 + $0x60] sm:$0xff]  ;;  %v1092_v23 = vmov 1.0   ;;  %v1093_v24 = vmov 0.0  }
  0x22   : > { %v230_v3 = vld [vmem:[%s1199_s21 + $0x58] sm:$0xff]  ;;  %987 = vset.pattern.permute.xlu2 %v1091_v4  ;;  %986 = vset.pattern.permute.xlu1 %v1091_v4  ;;  %v233_v6 = vld [vmem:[%s1199_s21 + $0x70] sm:$0xff]  ;;  %v227_v8 = vld [vmem:[%s1199_s21 + $0x40] sm:$0xff]  ;;  %p907_p2 = scmp.ne.s32.totalorder %s1072_s15, 1 }
  0x23   : > { %985 = vset.pattern.permute.xlu0 %v1091_v4  ;;  %303 = vperm.xlu1 %986, %v232_v2   ;;  %v229_v7 = vld [vmem:[%s1199_s21 + $0x50] sm:$0xff]  ;;  %v228_v9 = vld [vmem:[%s1199_s21 + $0x48] sm:$0xff]  ;;  %v226_v10 = vld [vmem:[%s1199_s21 + $0x38] sm:$0xff] }
  0x24   : > { %313 = vperm.xlu0 %985, %v234_v1   ;;  %293 = vperm.xlu2 %987, %v230_v3   ;;  %v224_v11 = vld [vmem:[%s1199_s21 + $0x28] sm:$0xff]  ;;  %v225_v12 = vld [vmem:[%s1199_s21 + $0x30] sm:$0xff]  ;;  %v223_v13 = vld [vmem:[%s1199_s21 + $0x20] sm:$0xff] }
  0x25   : > { %v221_v14 = vld [vmem:[%s1199_s21 + $0x10] sm:$0xff]  ;;  %v222_v15 = vld [vmem:[%s1199_s21 + $0x18] sm:$0xff]  ;;  %v220_v16 = vld [vmem:[%s1199_s21 + $0x8] sm:$0xff] }
  0x26   : > { %v219_v17 = vld [vmem:[%s1199_s21] sm:$0xff] }
  0x27   : > { %v1231_v20 = vld [vmem:[%s1191_s8] ss:$0 sm:$0xff] }
  0x2b   : > { %298 = vperm.xlu1 %986, %v231_v5  }
  0x2c   : > { %308 = vperm.xlu0 %985, %v233_v6   ;;  %288 = vperm.xlu2 %987, %v229_v7  }
  0x33   : > { %278 = vperm.xlu1 %986, %v227_v8   ;;  %v365_v8 = vlaneseq }
  0x34   : > { %283 = vperm.xlu0 %985, %v228_v9   ;;  %273 = vperm.xlu2 %987, %v226_v10  }
  0x3b   : > { %263 = vperm.xlu1 %986, %v224_v11  }
  0x3c   : > { %268 = vperm.xlu0 %985, %v225_v12   ;;  %258 = vperm.xlu2 %987, %v223_v13  }
  0x43   : > { %248 = vperm.xlu1 %986, %v221_v14  }
  0x44   : > { %253 = vperm.xlu0 %985, %v222_v15   ;;  %243 = vperm.xlu2 %987, %v220_v16   ;;  %v366_v15 = vshrl.u32 %v365_v8, 7 }
  0x46   : > { %vm368_vm13 = vcmp.eq.s32.totalorder %v366_v15, 1  ;;  %vm367_vm14 = vcmp.eq.s32.totalorder %v366_v15, 0 }
  0x4c   : > { %238 = vperm.xlu0 %985, %v219_v17  }
  0x7e   : > { %v1226_v18 = vpop.permute.xlu2 %293 }
  0x7f   : > { %vm327_vm2 = vcmp.le.f32.partialorder %v1231_v20, %v1226_v18 }
  0x80   : > { %v854_v34 = vsel %vm327_vm2, 1.0, %v1093_v24 }
  0x81   : > { %v1308_v41 = vsub.f32 %v854_v34, %v854_v34  ;;  %v989_v34 = vld [vmem:[%s212_s29] ss:$0 sm:$0xff] }
  0x83   : > { %v442_v50 = vand.u32 4294901760, %v1308_v41 }
  0x85   : > { %v443_v62 = vsub.f32 %v1308_v41, %v442_v50 }
  0x86   : > { %v1228_v19 = vpop.permute.xlu2 %288 }
  0x87   : > { %vm326_vm3 = vcmp.le.f32.partialorder %v1231_v20, %v1228_v19  ;;  %v444_v6 = vand.u32 4294901760, %v443_v62 }
  0x88   : > { %v853_v37 = vsel %vm326_vm3, 1.0, %v1093_v24 }
  0x89   : > { %v1321_v43 = vsub.f32 %v853_v37, %v853_v37  ;;  %v369_v37 = vsel %vm368_vm13, 1.0, %v1093_v24 }
  0x8b   : > { %v448_v53 = vand.u32 4294901760, %v1321_v43 }
  0x8d   : > { %v449_v63 = vsub.f32 %v1321_v43, %v448_v53 }
  0x8e   : > { %v1255_v27 = vpop.permute.xlu2 %273 }
  0x8f   : > { %vm323_vm6 = vcmp.le.f32.partialorder %v1231_v20, %v1255_v27  ;;  %v450_v11 = vand.u32 4294901760, %v449_v63 }
  0x90   : > { %v850_v51 = vsel %vm323_vm6, 1.0, %v1093_v24 }
  0x91   : > { %v1389_v59 = vsub.f32 %v850_v51, %v850_v51 }
  0x93   : > { %v466_v4 = vand.u32 4294901760, %v1389_v59 }
  0x95   : > { %v1233_v21 = vpop.permute.xlu1 %303 }
  0x96   : > { %v1235_v22 = vpop.permute.xlu0 %313  ;;  %vm329_vm1 = vcmp.le.f32.partialorder %v1231_v20, %v1233_v21  ;;  %v1326_v46 = vpop.permute.xlu2 %258 }
  0x97   : > { %vm331_vm0 = vcmp.le.f32.partialorder %v1231_v20, %v1235_v22  ;;  %v856_v28 = vsel %vm329_vm1, 1.0, %v1093_v24  ;;  %vm320_vm9 = vcmp.le.f32.partialorder %v1231_v20, %v1326_v46 }
  0x98   : > { %859 = vmatpush.msk.msra.mxu0 %vm331_vm0, %v1092_v23  ;;  %875 = vmatpush.msk.msra.mxu3 %vm331_vm0, %v1092_v23  ;;  %v858_v25 = vsel %vm331_vm0, 1.0, %v1093_v24  ;;  %v1272_v32 = vsub.f32 %v856_v28, %v856_v28  ;;  %v847_v3 = vsel %vm320_vm9, 1.0, %v1093_v24 }
  0x99   : > { %v1253_v26 = vsub.f32 %v858_v25, %v858_v25  ;;  %v1444_v12 = vsub.f32 %v847_v3, %v847_v3  ;;  %v467_v25 = vsub.f32 %v1389_v59, %v466_v4 }
  0x9a   : > { %v430_v42 = vand.u32 4294901760, %v1272_v32 }
  0x9b   : > { %519 = vmatpush.msra.mxu2 %v1253_v26  ;;  %v418_v29 = vand.u32 4294901760, %v1253_v26 }
  0x9c   : > { %v431_v49 = vsub.f32 %v1272_v32, %v430_v42 }
  0x9d   : > { %v1267_v30 = vpop.permute.xlu1 %298  ;;  %v419_v31 = vsub.f32 %v1253_v26, %v418_v29 }
  0x9e   : > { %v1274_v33 = vpop.permute.xlu0 %308  ;;  %vm328_vm4 = vcmp.le.f32.partialorder %v1231_v20, %v1267_v30  ;;  %v432_v60 = vand.u32 4294901760, %v431_v49  ;;  %v1430_v9 = vpop.permute.xlu2 %243  ;;  %v373_v49 = vsel %vm367_vm14, %v989_v34, %v369_v37 }
  0x9f   : > { %vm330_vm5 = vcmp.le.f32.partialorder %v1231_v20, %v1274_v33  ;;  %v420_v35 = vand.u32 4294901760, %v419_v31  ;;  %v855_v36 = vsel %vm328_vm4, 1.0, %v1093_v24  ;;  %vm317_vm12 = vcmp.le.f32.partialorder %v1231_v20, %v1430_v9  ;;  %v374_v33 = vld [vmem:[#allocation2] sm:$0xff] }
  0xa0   : > { %860 = vmatpush.msk.msra.mxu0 %vm330_vm5, %v1092_v23  ;;  %876 = vmatpush.msk.msra.mxu3 %vm330_vm5, %v1092_v23  ;;  %v857_v38 = vsel %vm330_vm5, 1.0, %v1093_v24  ;;  %v1304_v39 = vsub.f32 %v855_v36, %v855_v36  ;;  %v484_v36 = vand.u32 4294901760, %v1444_v12  ;;  %v844_v51 = vsel %vm317_vm12, 1.0, %v1093_v24 }
  0xa1   : > { %421 = vmatpush.msra.mxu1 %v420_v35  ;;  %v1306_v40 = vsub.f32 %v857_v38, %v857_v38 }
  0xa2   : > { %861 = vmatpush.msk.msra.mxu0 %vm329_vm1, %v1092_v23  ;;  %877 = vmatpush.msk.msra.mxu3 %vm329_vm1, %v1092_v23  ;;  %v436_v45 = vand.u32 4294901760, %v1304_v39  ;;  %v485_v63 = vsub.f32 %v1444_v12, %v484_v36 }
  0xa3   : > { %522 = vmatpush.msra.mxu2 %v1306_v40  ;;  %v424_v44 = vand.u32 4294901760, %v1306_v40 }
  0xa4   : > { %862 = vmatpush.msk.msra.mxu0 %vm328_vm4, %v1092_v23  ;;  %878 = vmatpush.msk.msra.mxu3 %vm328_vm4, %v1092_v23  ;;  %v437_v55 = vsub.f32 %v1304_v39, %v436_v45 }
  0xa5   : > { %525 = vmatpush.msra.mxu2 %v1272_v32  ;;  %v1337_v47 = vpop.permute.xlu1 %278  ;;  %v425_v48 = vsub.f32 %v1306_v40, %v424_v44 }
  0xa6   : > { %v1350_v52 = vpop.permute.xlu0 %283  ;;  %vm324_vm7 = vcmp.le.f32.partialorder %v1231_v20, %v1337_v47  ;;  %863 = vmatpush.msk.msra.mxu0 %vm327_vm2, %v1092_v23  ;;  %879 = vmatpush.msk.msra.mxu3 %vm327_vm2, %v1092_v23  ;;  %v438_v0 = vand.u32 4294901760, %v437_v55 }
  0xa7   : > { %vm325_vm8 = vcmp.le.f32.partialorder %v1231_v20, %v1350_v52  ;;  %528 = vmatpush.msra.mxu2 %v1304_v39  ;;  %v426_v54 = vand.u32 4294901760, %v425_v48  ;;  %v851_v56 = vsel %vm324_vm7, 1.0, %v1093_v24 }
  0xa8   : > { %864 = vmatpush.msk.msra.mxu0 %vm326_vm3, %v1092_v23  ;;  %880 = vmatpush.msk.msra.mxu3 %vm326_vm3, %v1092_v23  ;;  %v852_v57 = vsel %vm325_vm8, 1.0, %v1093_v24  ;;  %v1387_v58 = vsub.f32 %v851_v56, %v851_v56  ;;  %v468_v56 = vand.u32 4294901760, %v467_v25 }
  0xa9   : > { %427 = vmatpush.msra.mxu1 %v426_v54  ;;  %531 = vmatpush.msra.mxu2 %v1308_v41  ;;  %v1392_v61 = vsub.f32 %v852_v57, %v852_v57  ;;  %v1508_v54 = vand.u32 4294901760, %v373_v49 }
  0xaa   : > { %865 = vmatpush.msk.msra.mxu0 %vm325_vm8, %v1092_v23  ;;  %881 = vmatpush.msk.msra.mxu3 %vm325_vm8, %v1092_v23  ;;  %v460_v2 = vand.u32 4294901760, %v1387_v58 }
  0xab   : > { %433 = vmatpush.msra.mxu1 %v432_v60  ;;  %534 = vmatpush.msra.mxu2 %v1321_v43  ;;  %v454_v1 = vand.u32 4294901760, %v1392_v61 }
  0xac   : > { %866 = vmatpush.msk.msra.mxu0 %vm324_vm7, %v1092_v23  ;;  %882 = vmatpush.msk.msra.mxu3 %vm324_vm7, %v1092_v23  ;;  %v461_v13 = vsub.f32 %v1387_v58, %v460_v2 }
  0xad   : > { %439 = vmatpush.msra.mxu1 %v438_v0  ;;  %537 = vmatpush.msra.mxu2 %v1392_v61  ;;  %v1425_v5 = vpop.permute.xlu1 %263  ;;  %v455_v7 = vsub.f32 %v1392_v61, %v454_v1  ;;  %v408_v0 = vsub.f32 %v373_v49, %v1508_v54 }
  0xae   : > { %v1432_v10 = vpop.permute.xlu0 %268  ;;  %vm321_vm10 = vcmp.le.f32.partialorder %v1231_v20, %v1425_v5  ;;  %867 = vmatpush.msk.msra.mxu0 %vm323_vm6, %v1092_v23  ;;  %883 = vmatpush.msk.msra.mxu3 %vm323_vm6, %v1092_v23  ;;  %v462_v38 = vand.u32 4294901760, %v461_v13 }
  0xaf   : > { %vm322_vm11 = vcmp.le.f32.partialorder %v1231_v20, %v1432_v10  ;;  %445 = vmatpush.msra.mxu1 %v444_v6  ;;  %540 = vmatpush.msra.mxu2 %v1387_v58  ;;  %v848_v14 = vsel %vm321_vm10, 1.0, %v1093_v24  ;;  %v456_v28 = vand.u32 4294901760, %v455_v7  ;;  %v1534_v7 = vsub.f32 %v844_v51, %v844_v51 }
  0xb0   : > { %868 = vmatpush.msk.msra.mxu0 %vm322_vm11, %v1092_v23  ;;  %884 = vmatpush.msk.msra.mxu3 %vm322_vm11, %v1092_v23  ;;  %v849_v16 = vsel %vm322_vm11, 1.0, %v1093_v24  ;;  %v1468_v17 = vsub.f32 %v848_v14, %v848_v14  ;;  %v409_v13 = vand.u32 4294901760, %v408_v0 }
  0xb1   : > { %451 = vmatpush.msra.mxu1 %v450_v11  ;;  %543 = vmatpush.msra.mxu2 %v1389_v59  ;;  %v1476_v31 = vsub.f32 %v849_v16, %v849_v16  ;;  %v502_v37 = vand.u32 4294901760, %v1534_v7 }
  0xb2   : > { %869 = vmatpush.msk.msra.mxu0 %vm321_vm10, %v1092_v23  ;;  %885 = vmatpush.msk.msra.mxu3 %vm321_vm10, %v1092_v23  ;;  %v478_v35 = vand.u32 4294901760, %v1468_v17  ;;  %v410_v25 = vsub.f32 %v408_v0, %v409_v13 }
  0xb3   : > { %457 = vmatpush.msra.mxu1 %v456_v28  ;;  %546 = vmatpush.msra.mxu2 %v1476_v31  ;;  %v472_v48 = vand.u32 4294901760, %v1476_v31  ;;  %v486_v28 = vand.u32 4294901760, %v485_v63 }
  0xb4   : > { %870 = vmatpush.msk.msra.mxu0 %vm320_vm9, %v1092_v23  ;;  %886 = vmatpush.msk.msra.mxu3 %vm320_vm9, %v1092_v23  ;;  %v479_v60 = vsub.f32 %v1468_v17, %v478_v35 }
  0xb5   : > { %463 = vmatpush.msra.mxu1 %v462_v38  ;;  %549 = vmatpush.msra.mxu2 %v1468_v17  ;;  %v1511_v55 = vpop.permute.xlu1 %248  ;;  %v473_v57 = vsub.f32 %v1476_v31, %v472_v48 }
  0xb6   : > { %v1519_v62 = vpop.permute.xlu0 %253  ;;  %vm318_vm15 = vcmp.le.f32.partialorder %v1231_v20, %v1511_v55  ;;  %v480_v14 = vand.u32 4294901760, %v479_v60  ;;  %v503_v60 = vsub.f32 %v1534_v7, %v502_v37 }
  0xb7   : > { %vm319_vm13 = vcmp.le.f32.partialorder %v1231_v20, %v1519_v62  ;;  %469 = vmatpush.msra.mxu1 %v468_v56  ;;  %552 = vmatpush.msra.mxu2 %v1444_v12  ;;  %v474_v3 = vand.u32 4294901760, %v473_v57  ;;  %v845_v6 = vsel %vm318_vm15, 1.0, %v1093_v24  ;;  %v411_v56 = vand.u32 4294901760, %v410_v25 }
  0xb8   : > { %871 = vmatpush.msk.msra.mxu0 %vm319_vm13, %v1092_v23  ;;  %887 = vmatpush.msk.msra.mxu3 %vm319_vm13, %v1092_v23  ;;  %v846_v8 = vsel %vm319_vm13, 1.0, %v1093_v24  ;;  %v1548_v11 = vsub.f32 %v845_v6, %v845_v6 }
  0xb9   : > { %475 = vmatpush.msra.mxu1 %v474_v3  ;;  %v489_v15 = vsub.f32 %v846_v8, %v846_v8 }
  0xba   : > { %872 = vmatpush.msk.msra.mxu0 %vm318_vm15, %v1092_v23  ;;  %888 = vmatpush.msk.msra.mxu3 %vm318_vm15, %v1092_v23  ;;  %v496_v16 = vand.u32 4294901760, %v1548_v11 }
  0xbb   : > { %481 = vmatpush.msra.mxu1 %v480_v14  ;;  %555 = vmatpush.msra.mxu2 %v489_v15  ;;  %v490_v34 = vand.u32 4294901760, %v489_v15 }
  0xbc   : > { %873 = vmatpush.msk.msra.mxu0 %vm317_vm12, %v1092_v23  ;;  %889 = vmatpush.msk.msra.mxu3 %vm317_vm12, %v1092_v23  ;;  %v497_v49 = vsub.f32 %v1548_v11, %v496_v16 }
  0xbd   : > { %487 = vmatpush.msra.mxu1 %v486_v28  ;;  %558 = vmatpush.msra.mxu2 %v1548_v11  ;;  %v491_v38 = vsub.f32 %v489_v15, %v490_v34 }
  0xbe   : > { %v239_v51 = vpop.permute.xlu0 %238  ;;  %v498_v3 = vand.u32 4294901760, %v497_v49 }
  0xbf   : > { %vm316_vm14 = vcmp.le.f32.partialorder %v1231_v20, %v239_v51  ;;  %561 = vmatpush.msra.mxu2 %v1534_v7  ;;  %v492_v57 = vand.u32 4294901760, %v491_v38  ;;  %v504_v7 = vand.u32 4294901760, %v503_v60 }
  0xc0   : > { %874 = vmatpush.msk.msra.mxu0 %vm316_vm14, %v1092_v23  ;;  %890 = vmatpush.msk.msra.mxu3 %vm316_vm14, %v1092_v23  ;;  %v843_v63 = vsel %vm316_vm14, 1.0, %v1093_v24 }
  0xc1   : > { %493 = vmatpush.msra.mxu1 %v492_v57  ;;  %v507_v6 = vsub.f32 %v843_v63, %v843_v63  ;;  %412 = vmatmul.f32.vlgmr.msra.gmra.mxu0 %v411_v56 }
  0xc2   : > { %613 = vmatpush.msrb.mxu0 %v418_v29  ;;  %606 = vmatmul.f32.vlgmr.msra.gmra.mxu3 %v409_v13 }
  0xc3   : > { %499 = vmatpush.msra.mxu1 %v498_v3  ;;  %564 = vmatpush.msra.mxu2 %v507_v6  ;;  %v508_v8 = vand.u32 4294901760, %v507_v6 }
  0xc4   : > { %617 = vmatpush.msrb.mxu0 %v424_v44  ;;  %567 = vmatmul.f32.vlgmr.msra.gmra.mxu2 %v408_v0 }
  0xc5   : > { %505 = vmatpush.msra.mxu1 %v504_v7  ;;  %v509_v11 = vsub.f32 %v507_v6, %v508_v8 }
  0xc6   : > { %621 = vmatpush.msrb.mxu0 %v430_v42 }
  0xc7   : > { %v510_v24 = vand.u32 4294901760, %v509_v11 }
  0xc8   : > { %625 = vmatpush.msrb.mxu0 %v436_v45 }
  0xc9   : > { %511 = vmatpush.msra.mxu1 %v510_v24 }
  0xca   : > { %629 = vmatpush.msrb.mxu0 %v442_v50  ;;  %513 = vmatmul.f32.vlgmr.msra.gmra.mxu1 %v1508_v54 }
  0xcb   : > { %891 = vmatpush.msk.msrb.mxu1 %vm331_vm0, %v1092_v23 }
  0xcc   : > { %633 = vmatpush.msrb.mxu0 %v448_v53 }
  0xcd   : > { %892 = vmatpush.msk.msrb.mxu1 %vm330_vm5, %v1092_v23 }
  0xce   : > { %637 = vmatpush.msrb.mxu0 %v454_v1 }
  0xcf   : > { %893 = vmatpush.msk.msrb.mxu1 %vm329_vm1, %v1092_v23 }
  0xd0   : > { %641 = vmatpush.msrb.mxu0 %v460_v2 }
  0xd1   : > { %894 = vmatpush.msk.msrb.mxu1 %vm328_vm4, %v1092_v23 }
  0xd2   : > { %645 = vmatpush.msrb.mxu0 %v466_v4 }
  0xd3   : > { %895 = vmatpush.msk.msrb.mxu1 %vm327_vm2, %v1092_v23 }
  0xd4   : > { %649 = vmatpush.msrb.mxu0 %v472_v48 }
  0xd5   : > { %896 = vmatpush.msk.msrb.mxu1 %vm326_vm3, %v1092_v23 }
  0xd6   : > { %653 = vmatpush.msrb.mxu0 %v478_v35 }
  0xd7   : > { %897 = vmatpush.msk.msrb.mxu1 %vm325_vm8, %v1092_v23 }
  0xd8   : > { %657 = vmatpush.msrb.mxu0 %v484_v36 }
  0xd9   : > { %898 = vmatpush.msk.msrb.mxu1 %vm324_vm7, %v1092_v23 }
  0xda   : > { %661 = vmatpush.msrb.mxu0 %v490_v34 }
  0xdb   : > { %899 = vmatpush.msk.msrb.mxu1 %vm323_vm6, %v1092_v23 }
  0xdc   : > { %665 = vmatpush.msrb.mxu0 %v496_v16 }
  0xdd   : > { %900 = vmatpush.msk.msrb.mxu1 %vm322_vm11, %v1092_v23 }
  0xde   : > { %669 = vmatpush.msrb.mxu0 %v502_v37 }
  0xdf   : > { %901 = vmatpush.msk.msrb.mxu1 %vm321_vm10, %v1092_v23 }
  0xe0   : > { %673 = vmatpush.msrb.mxu0 %v508_v8 }
  0xe1   : > { %902 = vmatpush.msk.msrb.mxu1 %vm320_vm9, %v1092_v23  ;;  %675 = vmatmul.f32.vlgmr.msrb.gmra.mxu0 %v1508_v54 }
  0xe3   : > { %903 = vmatpush.msk.msrb.mxu1 %vm319_vm13, %v1092_v23 }
  0xe5   : > { %904 = vmatpush.msk.msrb.mxu1 %vm318_vm15, %v1092_v23 }
  0xe7   : > { %905 = vmatpush.msk.msrb.mxu1 %vm317_vm12, %v1092_v23 }
  0xe9   : > { %906 = vmatpush.msk.msrb.mxu1 %vm316_vm14, %v1092_v23 }
  0xea   : > { %712 = vmatmul.f32.vlgmr.msrb.gmra.mxu1 %v1508_v54 }
 0x13e   : > { %v413_v19 = vpop.f32.mrf.mxu0 }
 0x145   : > { %v607_v27 = vpop.f32.mrf.mxu3 }
 0x147   : > { %v514_v18 = vpop.f32.mrf.mxu1  ;;  %v568_v22 = vpop.f32.mrf.mxu2 }
 0x148   : > { %v515_v21 = vadd.f32 %v514_v18, %v413_v19 }
 0x14a   : > { %v569_v26 = vadd.f32 %v568_v22, %v515_v21 }
 0x14c   : > { %v608_v29 = vadd.f32 %v607_v27, %v569_v26 }
 0x15e   : > { %v676_v30 = vpop.f32.mrf.mxu0 }
 0x15f   : > { %v677_v32 = vadd.f32 %v676_v30, %v608_v29 }
 0x167   : > { %v713_v39 = vpop.f32.mrf.mxu1 }
 0x168   : > { %v714_v40 = vadd.f32 %v713_v39, %v677_v32  ;;  %721 = sbr.rel (%p907_p2) target bundleno = 389 (0x185), region = 40 }
 0x16a   : > { %v716_v41 = vadd.f32 %v714_v40, %v374_v33 }
 0x16c   : > { %717 = vst [vmem:[#allocation2] sm:$0xff] %v716_v41 }
 0x16d   : > { %v729_v46 = vld [vmem:[%s1191_s8 + $0x1] sm:$0x1]  ;;  %v730_v50 = vld [vmem:[%s1191_s8 + $0x2] sm:$0x1] }
 0x173   : > { %v722_v20 = vld [vmem:[#allocation2] sm:$0x1]  ;;  %v723_v23 = vld [vmem:[#allocation2 + $0x1] sm:$0x1] }
 0x174   : > { %990 = vlog2.f32 %v722_v20 }
 0x175   : > { %992 = vlog2.f32 %v723_v23 }
 0x17a   : > { %v991_v42 = vpop.eup %990 }
 0x17b   : > { %v993_v43 = vpop.eup %992  ;;  %v725_v44 = vmul.f32 0.6931472, %v991_v42 }
 0x17c   : > { %v727_v45 = vmul.f32 0.6931472, %v993_v43 }
 0x17e   : > { %v728_v47 = vsub.f32 %v725_v44, %v727_v45 }
 0x180   : > { %v731_v52 = vsub.f32 %v729_v46, %v728_v47 }
 0x182   : > { %v732_v53 = vmul.f32 %v731_v52, %v730_v50 }
 0x184   : > { %733 = vst [vmem:[%s1207_s23] sm:$0x1] %v732_v53 }
 0x185 PF: > { %s743_s6 = scalar_lea.hbm %s1724_s3, %s1076_s16  ;;  %s745_s7 = sshll.u32 %s1207_s23, 4  ;;  %s746_s7 = int_to_ptr.vmem [resolvable:$true] %s745_s7 }
 0x186   : > { %s747_s9 = sshll.u32 %s743_s6, 4  ;;  %s1730_s10 = sand.u32 1, %s1064_s13   ;;  %s748_s9 = int_to_ptr.hbm [resolvable:$true] %s747_s9 }
 0x187   : > { %s735_s11 = scalar_lea.sflag [#allocation4], %s1730_s10  ;;  %s1008_s20 = sshra.s32 %s748_s9, 4  ;;  %s1009_s20 = int_to_ptr.hbm [resolvable:$true] %s1008_s20 }
 0x188   : > { %s1010_s8 = scalar_lea.hbm %s1009_s20, 1  ;;  %s1014_s27 = scalar_lea.hbm %s1724_s3, 2 }
 0x189   : > { %p1011_p4 = scmp.ne.s32.totalorder %s1009_s20, %s1010_s8  ;;  %p1015_p7 = scmp.lt.s32.totalorder %s1009_s20, %s1724_s3 }
 0x18a   : > { %p1016_p8 = scmp.lt.s32.totalorder %s1014_s27, %s1010_s8 }
 0x18b   : > { %p1012_p5 = pnand %p1011_p4, %p1163_p3 }
 0x18c   : > { %p1017_p10 = por %p1016_p8, %p1015_p7 }
 0x18d   : > { %p1013_p6 = pneg %p1012_p5 }
 0x18f   : > { %p1018_p11 = pnand %p1017_p10, %p1013_p6 }
 0x191   : > { %1021 = shalt.err (!%p1018_p11)
}
 0x192   : > { %910 = dma.vmem_to_hbm [thread:$0]  (%p1163_p3), %s746_s7, 16, %s748_s9, %s735_s11  }
 0x193 PF: > { %p916_p12 = scmp.ge.s32.totalorder %s1088_s19, 2  ;;  %s759_s16 = sand.u32 1, %s1060_s12  }
 0x194   : > { %s760_s23 = scalar_lea.sflag [#allocation4], %s759_s16 }
 0x195   : > { %p913_p13 = pnand %p916_p12, %p1173_p9 }
 0x197   : > { %p914_p0 = pneg %p913_p13 }
 0x199   : > { %1055 = dma.done.wait (%p914_p0), %s760_s23, 16  }
 0x19a   : > { %1057 = vsyncadd (%p914_p0), %s760_s23, 4294967280  ;;  %s16_s19 = sadd.s32 1, %s1088_s19   ;;  %s1731_s24 = sld [smem:[#allocation6_spill]] }
 0x19b   : > { %p13_p1 = scmp.ge.s32.totalorder %s16_s19, 6   ;;  %s1732_s12 = smov %s1064_s13 }
 0x19c   : > { %s1733_s13 = smov %s1068_s14  ;;  %s1734_s14 = smov %s1181_s28 }
 0x19d   : > { %s1735_s15 = smov %s1080_s17  ;;  %s1736_s16 = smov %s1084_s18 }
 0x19e   : > { %s1737_s17 = smov %s1740_s22  ;;  %15 = sbr.rel (!%p13_p1) target bundleno = 5 (0x5), region = 81 }
 0x1a0   : > { %s1738_s18 = smov %s1731_s24 }
 0x1a3   :  { %765 = vsyncpa [#allocation4], 1 }
 0x1a4   :  { %767 = vsyncpa [#allocation4 + $0x1], 1 }

</bundles_post_ra>
